<compile_context>
chip_gen: v7x
topology: tpu7x:2x2x1
jax: 0.10.0
libtpu: 0.0.40
codegen_flags: <defaults>
</compile_context>

<pallas_src>
import functools

import jax
import jax.numpy as jnp
from jax.experimental import pallas as pl
from jax.experimental.pallas import tpu as pltpu


def _round_up(x, m):
    return ((x + m - 1) // m) * m


# ----------------------------------------------------------------------------
# Fused Pallas kernel: the whole decoder for one batch tile
# ----------------------------------------------------------------------------
def _decoder_fused_kernel(x_ref, w_ref, b_ref, o_ref, *, pdims, num_hidden,
                          compute_dtype):
    """One batch tile through every layer.

    x_ref : (block_m, pdims[0])          compute_dtype
    w_ref : (L, Pmax, Pmax)              compute_dtype, lane/zero padded slab
    b_ref : (L, 1, Pmax)                 float32
    o_ref : (block_m, pdims[-1])         output dtype

    Intermediates stay in vregs/VMEM; matmuls accumulate in f32; ReLU/sigmoid
    run on the f32 accumulator; the next matmul's LHS is cast back to
    compute_dtype (bf16 by default) for the MXU.
    """
    num_layers = num_hidden + 1
    h = x_ref[...]
    for l in range(num_layers):
        pin, pout = pdims[l], pdims[l + 1]
        w = w_ref[l, :pin, :pout]                    # static slices, lane-aligned
        b = b_ref[l, :, :pout]                       # (1, pout) f32, broadcasts
        y = jnp.dot(h, w, preferred_element_type=jnp.float32) + b
        if l < num_hidden:
            h = jnp.maximum(y, 0.0).astype(compute_dtype)
        else:
            o_ref[...] = jax.nn.sigmoid(y).astype(o_ref.dtype)


# ----------------------------------------------------------------------------
# One-time parameter packing (outside the per-call hot path)
# ----------------------------------------------------------------------------
def pack_decoder_params(params, compute_dtype=jnp.bfloat16):
    """Pad & stack all layer weights/biases into lane-dense slabs, once.

    Zero padding is exact: padded input lanes / weight rows contribute 0,
    padded hidden lanes are relu(0)=0, padded sigmoid lanes are sliced off.
    """
    layers = list(params["hidden"]) + [params["reconstruction"]]
    num_hidden = len(params["hidden"])
    dims = [layers[0][0].shape[0]] + [w.shape[1] for (w, _) in layers]
    pdims = [_round_up(d, 128) for d in dims]
    pmax = max(pdims)
    L = len(layers)

    w_slab = jnp.zeros((L, pmax, pmax), compute_dtype)
    b_slab = jnp.zeros((L, 1, pmax), jnp.float32)
    for l, (w, b) in enumerate(layers):
        kin, kout = w.shape
        w_slab = w_slab.at[l, :kin, :kout].set(w.astype(compute_dtype))
        b_slab = b_slab.at[l, 0, :kout].set(b.astype(jnp.float32))

    return {
        "w_slab": w_slab,
        "b_slab": b_slab,
        "dims": tuple(dims),
        "pdims": tuple(pdims),
        "num_hidden": num_hidden,
        "compute_dtype": compute_dtype,
    }


# ----------------------------------------------------------------------------
# Wrapper: pad input batch, grid over batch, one pallas_call
# ----------------------------------------------------------------------------
def decoder_forward(packed, x):
    """Pallas-backed forward: relu hidden layers, sigmoid reconstruction."""
    dims, pdims = packed["dims"], packed["pdims"]
    num_hidden = packed["num_hidden"]
    cdt = packed["compute_dtype"]
    w_slab, b_slab = packed["w_slab"], packed["b_slab"]
    num_layers = num_hidden + 1

    M, K0 = x.shape
    assert K0 == dims[0], (K0, dims[0])
    out_dtype = jnp.float32

    # Batch tile: large tiles amortize the ~0.35us per-step overhead; keep at
    # least 2 grid steps for moderate/large batches so ("parallel",) can shard
    # across both v7x TensorCores.
    if M >= 16:
        block_m = min(512, _round_up((M + 1) // 2, 8))
    else:
        block_m = _round_up(max(M, 1), 8)
    Mp = _round_up(M, block_m)

    # Only the input is padded per call (batch-dependent); weights were padded
    # once in pack_decoder_params.
    if (Mp, pdims[0]) == (M, K0) and x.dtype == cdt:
        xp = x
    else:
        xp = jnp.zeros((Mp, pdims[0]), cdt).at[:M, :K0].set(x.astype(cdt))

    grid = (Mp // block_m,)

    in_specs = [
        pl.BlockSpec((block_m, pdims[0]), lambda i: (i, 0)),       # x tile
        pl.BlockSpec(w_slab.shape, lambda i: (0, 0, 0)),           # resident weights
        pl.BlockSpec(b_slab.shape, lambda i: (0, 0, 0)),           # resident biases
    ]
    out_specs = pl.BlockSpec((block_m, pdims[-1]), lambda i: (i, 0))

    # Cost estimate from the REAL dims (hint for XLA scheduling only).
    w_itemsize = jnp.dtype(cdt).itemsize
    flops = sum(2 * M * dims[i] * dims[i + 1] for i in range(num_layers))
    bytes_accessed = (
        M * dims[0] * w_itemsize
        + sum(dims[i] * dims[i + 1] * w_itemsize + dims[i + 1] * 4
              for i in range(num_layers))
        + M * dims[-1] * jnp.dtype(out_dtype).itemsize
    )
    cost = pl.CostEstimate(
        flops=flops,
        transcendentals=M * dims[-1],        # sigmoid on the final layer
        bytes_accessed=bytes_accessed,
    )

    kernel = functools.partial(
        _decoder_fused_kernel,
        pdims=pdims,
        num_hidden=num_hidden,
        compute_dtype=cdt,
    )

    out_p = pl.pallas_call(
        kernel,
        out_shape=jax.ShapeDtypeStruct((Mp, pdims[-1]), out_dtype),
        grid=grid,
        in_specs=in_specs,
        out_specs=out_specs,
        compiler_params=pltpu.CompilerParams(
            dimension_semantics=("parallel",),
            # Well above what these tiles need; above the 16/32 MiB scoped
            # defaults, below v7x's 64 MiB physical VMEM.
            vmem_limit_bytes=48 * 1024 * 1024,
        ),
        cost_estimate=cost,
    )(xp, w_slab, b_slab)

    return out_p[:M, : dims[-1]]


# ----------------------------------------------------------------------------
# Parameter setup (plain JAX) + pure-JAX reference
# ----------------------------------------------------------------------------
def init_decoder_params(key, dims):
    """dims = [z_dim, [hidden_dims...], x_dim], mimics nn.Linear default init."""
    z_dim, h_dims, x_dim = dims
    neurons = [z_dim, *h_dims]
    params = {"hidden": [], "reconstruction": None}

    def init_linear(k, fan_in, fan_out):
        kw, kb = jax.random.split(k)
        bound = 1.0 / jnp.sqrt(jnp.float32(fan_in))
        # Stored as (in, out); PyTorch stores (out, in) -- forward is the same.
        w = jax.random.uniform(kw, (fan_in, fan_out), jnp.float32, -bound, bound)
        b = jax.random.uniform(kb, (fan_out,), jnp.float32, -bound, bound)
        return w, b

    keys = jax.random.split(key, len(neurons))
    for i in range(1, len(neurons)):
        params["hidden"].append(init_linear(keys[i - 1], neurons[i - 1], neurons[i]))
    params["reconstruction"] = init_linear(keys[-1], h_dims[-1], x_dim)
    return params


def decoder_forward_ref(params, x):
    """Pure-JAX f32 reference for correctness checking."""
    for (w, b) in params["hidden"]:
        x = jnp.maximum(x @ w + b, 0.0)
    w, b = params["reconstruction"]
    return jax.nn.sigmoid(x @ w + b)


if __name__ == "__main__":
    # dims = [latent_dim, [hidden_dims], input_dim]
    z_dim, h_dims, x_dim = 8, [32, 32], 64

    key = jax.random.PRNGKey(0)
    k_params, k_x, k_x2 = jax.random.split(key, 3)
    params = init_decoder_params(k_params, [z_dim, h_dims, x_dim])

    # --- f32 compute path: exactness of the padding / fusion scheme ---------
    batch = 2
    z = jax.random.normal(k_x, (batch, z_dim), dtype=jnp.float32)
    packed_f32 = pack_decoder_params(params, compute_dtype=jnp.float32)
    out = jax.block_until_ready(decoder_forward(packed_f32, z))
    ref = decoder_forward_ref(params, z)
    assert out.shape == (batch, x_dim), out.shape
    assert jnp.allclose(out, ref, atol=1e-5, rtol=1e-5), "f32 mismatch vs. reference"

    # --- bf16 compute path (MXU fast path on v6e/v7x), multi-step grid ------
    batch2 = 192
    z2 = jax.random.normal(k_x2, (batch2, z_dim), dtype=jnp.float32)
    packed_bf16 = pack_decoder_params(params, compute_dtype=jnp.bfloat16)
    out2 = jax.block_until_ready(decoder_forward(packed_bf16, z2))
    ref2 = decoder_forward_ref(params, z2)
    assert out2.shape == (batch2, x_dim), out2.shape
    assert jnp.allclose(out2, ref2, atol=2e-2, rtol=0), "bf16 mismatch vs. reference"

    print("KERNEL_OK")
</pallas_src>

<mosaic_0001>
module attributes {stable_mosaic.version = 11 : i64} {
  func.func @_decoder_fused_kernel(%arg0: i32, %arg1: memref<8x128xf32, #tpu.memory_space<vmem>>, %arg2: memref<3x128x128xf32, #tpu.memory_space<vmem>>, %arg3: memref<3x1x128xf32, #tpu.memory_space<vmem>>, %arg4: memref<8x128xf32, #tpu.memory_space<vmem>>) attributes {dimension_semantics = [#tpu.dimension_semantics<parallel>], iteration_bounds = array<i64: 1>, scalar_prefetch = 0 : i64, scratch_operands = 0 : i64, tpu.core_type = #tpu.core_type<tc>, window_params = [{transform_indices = @transform_0, window_bounds = array<i64: 8, 128>}, {pipeline_mode = #tpu.pipeline_mode<synchronous>, transform_indices = @transform_1, window_bounds = array<i64: 3, 128, 128>}, {pipeline_mode = #tpu.pipeline_mode<synchronous>, transform_indices = @transform_2, window_bounds = array<i64: 3, 1, 128>}, {transform_indices = @transform_3, window_bounds = array<i64: 8, 128>}]} {
    %c0 = arith.constant 0 : index
    %c0_0 = arith.constant 0 : index
    %0 = vector.load %arg1[%c0, %c0_0] : memref<8x128xf32, #tpu.memory_space<vmem>>, vector<8x128xf32>
    %c0_1 = arith.constant 0 : index
    %c0_2 = arith.constant 0 : index
    %c0_3 = arith.constant 0 : index
    %1 = vector.load %arg2[%c0_1, %c0_2, %c0_3] : memref<3x128x128xf32, #tpu.memory_space<vmem>>, vector<1x128x128xf32>
    %2 = vector.shape_cast %1 : vector<1x128x128xf32> to vector<128x128xf32>
    %c0_4 = arith.constant 0 : index
    %c0_5 = arith.constant 0 : index
    %c0_6 = arith.constant 0 : index
    %3 = vector.load %arg3[%c0_4, %c0_5, %c0_6] : memref<3x1x128xf32, #tpu.memory_space<vmem>>, vector<1x1x128xf32>
    %4 = vector.shape_cast %3 : vector<1x1x128xf32> to vector<1x128xf32>
    %cst = arith.constant dense<0.000000e+00> : vector<8x128xf32>
    %5 = tpu.matmul %0, %2, %cst {dimension_numbers = #tpu.dot_dimension_numbers<[1], [0], [0], [1], [0, 0, 1, 1], [], []>} : vector<8x128xf32>, vector<128x128xf32>, vector<8x128xf32> -> vector<8x128xf32>
    %6 = vector.broadcast %4 : vector<1x128xf32> to vector<8x128xf32>
    %7 = arith.addf %5, %6 : vector<8x128xf32>
    %cst_7 = arith.constant 0.000000e+00 : f32
    %8 = vector.broadcast %cst_7 : f32 to vector<8x128xf32>
    %9 = arith.maximumf %7, %8 : vector<8x128xf32>
    %c1 = arith.constant 1 : index
    %c0_8 = arith.constant 0 : index
    %c0_9 = arith.constant 0 : index
    %10 = vector.load %arg2[%c1, %c0_8, %c0_9] : memref<3x128x128xf32, #tpu.memory_space<vmem>>, vector<1x128x128xf32>
    %11 = vector.shape_cast %10 : vector<1x128x128xf32> to vector<128x128xf32>
    %c1_10 = arith.constant 1 : index
    %c0_11 = arith.constant 0 : index
    %c0_12 = arith.constant 0 : index
    %12 = vector.load %arg3[%c1_10, %c0_11, %c0_12] : memref<3x1x128xf32, #tpu.memory_space<vmem>>, vector<1x1x128xf32>
    %13 = vector.shape_cast %12 : vector<1x1x128xf32> to vector<1x128xf32>
    %cst_13 = arith.constant dense<0.000000e+00> : vector<8x128xf32>
    %14 = tpu.matmul %9, %11, %cst_13 {dimension_numbers = #tpu.dot_dimension_numbers<[1], [0], [0], [1], [0, 0, 1, 1], [], []>} : vector<8x128xf32>, vector<128x128xf32>, vector<8x128xf32> -> vector<8x128xf32>
    %15 = vector.broadcast %13 : vector<1x128xf32> to vector<8x128xf32>
    %16 = arith.addf %14, %15 : vector<8x128xf32>
    %cst_14 = arith.constant 0.000000e+00 : f32
    %17 = vector.broadcast %cst_14 : f32 to vector<8x128xf32>
    %18 = arith.maximumf %16, %17 : vector<8x128xf32>
    %c2 = arith.constant 2 : index
    %c0_15 = arith.constant 0 : index
    %c0_16 = arith.constant 0 : index
    %19 = vector.load %arg2[%c2, %c0_15, %c0_16] : memref<3x128x128xf32, #tpu.memory_space<vmem>>, vector<1x128x128xf32>
    %20 = vector.shape_cast %19 : vector<1x128x128xf32> to vector<128x128xf32>
    %c2_17 = arith.constant 2 : index
    %c0_18 = arith.constant 0 : index
    %c0_19 = arith.constant 0 : index
    %21 = vector.load %arg3[%c2_17, %c0_18, %c0_19] : memref<3x1x128xf32, #tpu.memory_space<vmem>>, vector<1x1x128xf32>
    %22 = vector.shape_cast %21 : vector<1x1x128xf32> to vector<1x128xf32>
    %cst_20 = arith.constant dense<0.000000e+00> : vector<8x128xf32>
    %23 = tpu.matmul %18, %20, %cst_20 {dimension_numbers = #tpu.dot_dimension_numbers<[1], [0], [0], [1], [0, 0, 1, 1], [], []>} : vector<8x128xf32>, vector<128x128xf32>, vector<8x128xf32> -> vector<8x128xf32>
    %24 = vector.broadcast %22 : vector<1x128xf32> to vector<8x128xf32>
    %25 = arith.addf %23, %24 : vector<8x128xf32>
    %26 = arith.negf %25 : vector<8x128xf32>
    %27 = math.exp %26 : vector<8x128xf32>
    %cst_21 = arith.constant 1.000000e+00 : f32
    %28 = vector.broadcast %cst_21 : f32 to vector<8x128xf32>
    %29 = arith.addf %28, %27 : vector<8x128xf32>
    %30 = arith.divf %28, %29 : vector<8x128xf32>
    %c0_22 = arith.constant 0 : index
    %c0_23 = arith.constant 0 : index
    %31 = vector.load %arg4[%c0_22, %c0_23] : memref<8x128xf32, #tpu.memory_space<vmem>>, vector<8x128xf32>
    tpu.vector_store %arg4[%c0_22, %c0_23], %30 {strides = array<i32>} : memref<8x128xf32, #tpu.memory_space<vmem>>, vector<8x128xf32>,
    return
  }
  func.func @transform_0(%arg0: i32) -> (i32, i32) {
    %c0_i32 = arith.constant 0 : i32
    %c0_i32_0 = arith.constant 0 : i32
    return %arg0, %c0_i32 : i32, i32
  }
  func.func @transform_1(%arg0: i32) -> (i32, i32, i32) {
    %c0_i32 = arith.constant 0 : i32
    %c0_i32_0 = arith.constant 0 : i32
    %c0_i32_1 = arith.constant 0 : i32
    %c0_i32_2 = arith.constant 0 : i32
    return %c0_i32, %c0_i32_0, %c0_i32_1 : i32, i32, i32
  }
  func.func @transform_2(%arg0: i32) -> (i32, i32, i32) {
    %c0_i32 = arith.constant 0 : i32
    %c0_i32_0 = arith.constant 0 : i32
    %c0_i32_1 = arith.constant 0 : i32
    %c0_i32_2 = arith.constant 0 : i32
    return %c0_i32, %c0_i32_0, %c0_i32_1 : i32, i32, i32
  }
  func.func @transform_3(%arg0: i32) -> (i32, i32) {
    %c0_i32 = arith.constant 0 : i32
    %c0_i32_0 = arith.constant 0 : i32
    return %arg0, %c0_i32 : i32, i32
  }
}

</mosaic_0001>

<bundles_post_ra>
// kernel: tpu_custom_call.1
= control target key start
LH: loop header
LB: loop body
LE: loop exit
PB: predicated region body
PF: predicated region fallthrough
CT: control target
= control target key end

     0   :  { %8 = vsyncpa [#allocation3], 0  ;;  %s778_s0 = inlined_call_operand.hbm [shape: f32[8,128], index: 0, kind: input, shape index: {}]   ;;  %s779_s1 = inlined_call_operand.hbm [shape: f32[3,128,128], index: 1, kind: input, shape index: {}]   ;;  %s780_s2 = inlined_call_operand.vmem [shape: f32[3,1,128], index: 2, kind: input, shape index: {}]   ;;  %s781_s3 = inlined_call_operand.hbm [shape: f32[8,128], index: 3, kind: output, shape index: {}]  }
   0x1   :  { %9 = vsyncpa [#allocation6], 0 }
   0x2   :  { %10 = vsyncpa [#allocation4], 0  ;;  %s668_s12 = smov [#allocation2]   ;;  %s669_s14 = smov [#allocation5]  }
   0x3   :  { %s17_s13 = sshll.u32 %s668_s12, 4  ;;  %s26_s15 = sshll.u32 %s669_s14, 4  ;;  %s18_s13 = int_to_ptr.vmem [resolvable:$true] %s17_s13  ;;  %s696_s15 = int_to_ptr.vmem [resolvable:$true] %s26_s15 }
   0x4   :  { %s596_s18 = scalar_lea.hbm %s778_s0, 128 }
   0x5   :  { %p597_p0 = scmp.ne.s32.totalorder %s778_s0, %s596_s18  ;;  %p600_p1 = scmp.lt.u32.totalorder %s596_s18, %s778_s0 }
   0x7   :  { %p602_p2 = pnand %p600_p1, %p597_p0 }
   0x9   :  { %605 = shalt.err (!%p602_p2)
}
   0xa   :  { %s606_s23 = scalar_lea.vmem %s18_s13, 128  ;;  %p611_p4 = scmp.lt.s32.totalorder %s18_s13, %s18_s13 }
   0xb   :  { %p607_p3 = scmp.ne.s32.totalorder %s18_s13, %s606_s23  ;;  %p612_p5 = scmp.lt.s32.totalorder %s606_s23, %s606_s23 }
   0xd   :  { %p613_p6 = por %p612_p5, %p611_p4 }
   0xf   :  { %p614_p7 = pnand %p613_p6, %p607_p3 }
  0x11   :  { %617 = shalt.err (!%p614_p7)
}
  0x12   :  { %20 = dma.hbm_to_vmem [thread:$0]  %s778_s0, 128, %s18_s13, [#allocation3]  }
  0x13   :  { %s618_s28 = scalar_lea.hbm %s779_s1, 6144 }
  0x14   :  { %p619_p8 = scmp.ne.s32.totalorder %s779_s1, %s618_s28  ;;  %p622_p9 = scmp.lt.u32.totalorder %s618_s28, %s779_s1 }
  0x16   :  { %p624_p10 = pnand %p622_p9, %p619_p8 }
  0x18   :  { %627 = shalt.err (!%p624_p10)
}
  0x19   :  { %s628_s6 = scalar_lea.vmem %s696_s15, 6144  ;;  %p633_p12 = scmp.lt.s32.totalorder %s696_s15, %s696_s15 }
  0x1a   :  { %p629_p11 = scmp.ne.s32.totalorder %s696_s15, %s628_s6  ;;  %p634_p13 = scmp.lt.s32.totalorder %s628_s6, %s628_s6 }
  0x1c   :  { %p635_p0 = por %p634_p13, %p633_p12 }
  0x1e   :  { %p636_p1 = pnand %p635_p0, %p629_p11 }
  0x20   :  { %639 = shalt.err (!%p636_p1)
}
  0x21   :  { %s670_s0 = smov 128   ;;  %s671_s7 = smov 8  }
  0x22   :  { %32 = dma.hbm_to_vmem [thread:$0]  %s779_s1, 6144, %s696_s15, [#allocation6], %s670_s0, %s670_s0, %s671_s7  }
  0x23   :  { %662 = dma.done.wait [#allocation3], 128  }
  0x24   :  { %663 = vsyncadd [#allocation3], 4294967168 }
  0x25   :  { %664 = dma.done.wait [#allocation6], 6144  }
  0x26   :  { %665 = vsyncadd [#allocation6], 4294961152  ;;  %v672_v0 = vmov 0.0|0.0   ;;  %vm673_vm0 = vmmov 0   ;;  %v674_v1 = vmov 0.0   ;;  %v42_v2 = vld [vmem:[#allocation5] sm:$0xff] }
  0x27   :  { %512 = vmatprep.subr.bf16.mxu0 %v672_v0  ;;  %439 = vmatprep.mubr.msk.f32.mxu0 %vm673_vm0, %v674_v1  ;;  %v43_v3 = vld [vmem:[#allocation5 + $0x8] sm:$0xff]  ;;  %v44_v4 = vld [vmem:[#allocation5 + $0x10] sm:$0xff]  ;;  %v45_v6 = vld [vmem:[#allocation5 + $0x18] sm:$0xff]  ;;  %s675_s15 = smov [#allocation7]  }
  0x28   :  { %536 = vmatprep.subr.bf16.mxu1 %v672_v0  ;;  %474 = vmatprep.mubr.msk.f32.mxu1 %vm673_vm0, %v674_v1  ;;  %v513_v5 = vpack.c.bf16 %v43_v3, %v42_v2  ;;  %v516_v7 = vpack.c.bf16 %v45_v6, %v44_v4  ;;  %v46_v8 = vld [vmem:[#allocation5 + $0x20] sm:$0xff]  ;;  %v47_v9 = vld [vmem:[#allocation5 + $0x28] sm:$0xff]  ;;  %v139_v12 = vld [vmem:[#allocation5 + $0x90] sm:$0xff]  ;;  %s340_s16 = sshll.u32 %s675_s15, 4  ;;  %s341_s16 = int_to_ptr.vmem [resolvable:$true] %s340_s16 }
  0x29   :  { %v137_v10 = vld [vmem:[#allocation5 + $0x80] sm:$0xff]  ;;  %v138_v11 = vld [vmem:[#allocation5 + $0x88] sm:$0xff]  ;;  %v140_v13 = vld [vmem:[#allocation5 + $0x98] sm:$0xff]  ;;  %v519_v14 = vpack.c.bf16 %v47_v9, %v46_v8  ;;  %s640_s17 = scalar_lea.vmem %s341_s16, 128  ;;  %p645_p3 = scmp.lt.s32.totalorder %s341_s16, %s341_s16 }
  0x2a   :  { %514 = vmatpush3.bf16.msra.mxu0 %v513_v5  ;;  %v537_v15 = vpack.c.bf16 %v138_v11, %v137_v10  ;;  %v48_v16 = vld [vmem:[#allocation5 + $0x30] sm:$0xff]  ;;  %v49_v17 = vld [vmem:[#allocation5 + $0x38] sm:$0xff]  ;;  %v540_v18 = vpack.c.bf16 %v140_v13, %v139_v12  ;;  %v141_v19 = vld [vmem:[#allocation5 + $0xa0] sm:$0xff]  ;;  %p641_p2 = scmp.ne.s32.totalorder %s341_s16, %s640_s17  ;;  %p646_p4 = scmp.lt.s32.totalorder %s640_s17, %s640_s17 }
  0x2b   :  { %515 = vmatprep.subr.bf16.mxu0 %v672_v0  ;;  %v142_v20 = vld [vmem:[#allocation5 + $0xa8] sm:$0xff]  ;;  %v522_v21 = vpack.c.bf16 %v49_v17, %v48_v16  ;;  %v50_v22 = vld [vmem:[#allocation5 + $0x40] sm:$0xff]  ;;  %v143_v25 = vld [vmem:[#allocation5 + $0xb0] sm:$0xff] }
  0x2c   :  { %538 = vmatpush3.bf16.msra.mxu1 %v537_v15  ;;  %v51_v23 = vld [vmem:[#allocation5 + $0x48] sm:$0xff]  ;;  %v543_v24 = vpack.c.bf16 %v142_v20, %v141_v19  ;;  %v144_v26 = vld [vmem:[#allocation5 + $0xb8] sm:$0xff]  ;;  %v52_v28 = vld [vmem:[#allocation5 + $0x50] sm:$0xff]  ;;  %p647_p5 = por %p646_p4, %p645_p3 }
  0x2d   :  { %539 = vmatprep.subr.bf16.mxu1 %v672_v0  ;;  %v525_v27 = vpack.c.bf16 %v51_v23, %v50_v22  ;;  %v53_v29 = vld [vmem:[#allocation5 + $0x58] sm:$0xff]  ;;  %v546_v30 = vpack.c.bf16 %v144_v26, %v143_v25  ;;  %v145_v31 = vld [vmem:[#allocation5 + $0xc0] sm:$0xff]  ;;  %v146_v32 = vld [vmem:[#allocation5 + $0xc8] sm:$0xff] }
  0x2e   :  { %517 = vmatpush3.bf16.msra.mxu0 %v516_v7  ;;  %v528_v33 = vpack.c.bf16 %v53_v29, %v52_v28  ;;  %v54_v34 = vld [vmem:[#allocation5 + $0x60] sm:$0xff]  ;;  %v55_v35 = vld [vmem:[#allocation5 + $0x68] sm:$0xff]  ;;  %v549_v36 = vpack.c.bf16 %v146_v32, %v145_v31  ;;  %v147_v37 = vld [vmem:[#allocation5 + $0xd0] sm:$0xff]  ;;  %p648_p6 = pnand %p647_p5, %p641_p2 }
  0x2f   :  { %518 = vmatprep.subr.bf16.mxu0 %v672_v0  ;;  %v148_v38 = vld [vmem:[#allocation5 + $0xd8] sm:$0xff]  ;;  %v531_v39 = vpack.c.bf16 %v55_v35, %v54_v34  ;;  %v56_v40 = vld [vmem:[#allocation5 + $0x70] sm:$0xff]  ;;  %v149_v43 = vld [vmem:[#allocation5 + $0xe0] sm:$0xff] }
  0x30   :  { %541 = vmatpush3.bf16.msra.mxu1 %v540_v18  ;;  %v57_v41 = vld [vmem:[#allocation5 + $0x78] sm:$0xff]  ;;  %v552_v42 = vpack.c.bf16 %v148_v38, %v147_v37  ;;  %v150_v44 = vld [vmem:[#allocation5 + $0xe8] sm:$0xff]  ;;  %v151_v48 = vld [vmem:[#allocation5 + $0xf0] sm:$0xff] }
  0x31   :  { %542 = vmatprep.subr.bf16.mxu1 %v672_v0  ;;  %v534_v45 = vpack.c.bf16 %v57_v41, %v56_v40  ;;  %v555_v46 = vpack.c.bf16 %v150_v44, %v149_v43  ;;  %v41_v47 = vld [vmem:[#allocation2] sm:$0xff]  ;;  %v233_v51 = vld [vmem:[#allocation5 + $0x100] sm:$0xff]  ;;  %v234_v52 = vld [vmem:[#allocation5 + $0x108] sm:$0xff] }
  0x32   :  { %520 = vmatpush3.bf16.msra.mxu0 %v519_v14  ;;  %v152_v49 = vld [vmem:[#allocation5 + $0xf8] sm:$0xff]  ;;  %v235_v53 = vld [vmem:[#allocation5 + $0x110] sm:$0xff]  ;;  %v561_v54 = vpack.c.bf16 %v234_v52, %v233_v51  ;;  %v237_v57 = vld [vmem:[#allocation5 + $0x120] sm:$0xff] }
  0x33   :  { %521 = vmatprep.subr.bf16.mxu0 %v672_v0  ;;  %v558_v50 = vpack.c.bf16 %v152_v49, %v151_v48  ;;  %v236_v55 = vld [vmem:[#allocation5 + $0x118] sm:$0xff]  ;;  %v238_v58 = vld [vmem:[#allocation5 + $0x128] sm:$0xff]  ;;  %v239_v60 = vld [vmem:[#allocation5 + $0x130] sm:$0xff] }
  0x34   :  { %544 = vmatpush3.bf16.msra.mxu1 %v543_v24  ;;  %v564_v56 = vpack.c.bf16 %v236_v55, %v235_v53  ;;  %v567_v59 = vpack.c.bf16 %v238_v58, %v237_v57  ;;  %v240_v61 = vld [vmem:[#allocation5 + $0x138] sm:$0xff]  ;;  %v241_v63 = vld [vmem:[#allocation5 + $0x140] sm:$0xff]  ;;  %v243_v3 = vld [vmem:[#allocation5 + $0x150] sm:$0xff] }
  0x35   :  { %545 = vmatprep.subr.bf16.mxu1 %v672_v0  ;;  %v570_v62 = vpack.c.bf16 %v240_v61, %v239_v60  ;;  %v244_v4 = vld [vmem:[#allocation5 + $0x158] sm:$0xff]  ;;  %v245_v6 = vld [vmem:[#allocation5 + $0x160] sm:$0xff]  ;;  %v246_v7 = vld [vmem:[#allocation5 + $0x168] sm:$0xff] }
  0x36   :  { %523 = vmatpush3.bf16.msra.mxu0 %v522_v21  ;;  %v576_v5 = vpack.c.bf16 %v244_v4, %v243_v3  ;;  %v579_v8 = vpack.c.bf16 %v246_v7, %v245_v6  ;;  %v350_v9 = vld [vmem:[%s780_s2] ss:$0 sm:$0xff]  ;;  %v247_v14 = vld [vmem:[#allocation5 + $0x170] sm:$0xff]  ;;  %v352_v17 = vld [vmem:[%s780_s2 + $0x1] ss:$0 sm:$0xff] }
  0x37   :  { %524 = vmatprep.subr.bf16.mxu0 %v672_v0  ;;  %v248_v15 = vld [vmem:[#allocation5 + $0x178] sm:$0xff] }
  0x38   :  { %547 = vmatpush3.bf16.msra.mxu1 %v546_v30  ;;  %v582_v16 = vpack.c.bf16 %v248_v15, %v247_v14  ;;  %v354_v21 = vld [vmem:[%s780_s2 + $0x2] ss:$0 sm:$0xff] }
  0x39   :  { %548 = vmatprep.subr.bf16.mxu1 %v672_v0 }
  0x3a   :  { %526 = vmatpush3.bf16.msra.mxu0 %v525_v27 }
  0x3b   :  { %527 = vmatprep.subr.bf16.mxu0 %v672_v0 }
  0x3c   :  { %550 = vmatpush3.bf16.msra.mxu1 %v549_v36 }
  0x3d   :  { %551 = vmatprep.subr.bf16.mxu1 %v672_v0 }
  0x3e   :  { %529 = vmatpush3.bf16.msra.mxu0 %v528_v33 }
  0x3f   :  { %530 = vmatprep.subr.bf16.mxu0 %v672_v0 }
  0x40   :  { %553 = vmatpush3.bf16.msra.mxu1 %v552_v42 }
  0x41   :  { %554 = vmatprep.subr.bf16.mxu1 %v672_v0 }
  0x42   :  { %532 = vmatpush3.bf16.msra.mxu0 %v531_v39 }
  0x43   :  { %533 = vmatprep.subr.bf16.mxu0 %v672_v0 }
  0x44   :  { %556 = vmatpush3.bf16.msra.mxu1 %v555_v46 }
  0x45   :  { %557 = vmatprep.subr.bf16.mxu1 %v672_v0 }
  0x46   :  { %535 = vmatpush3.bf16.msra.mxu0 %v534_v45 }
  0x47   :  { %560 = vmatprep.subr.bf16.mxu0 %v672_v0 }
  0x48   :  { %559 = vmatpush3.bf16.msra.mxu1 %v558_v50 }
  0x49   :  { %440 = vmatmul.mubr.f32.vlgmr.msra.gmra.mrb[0].mxu0 %v41_v47 }
  0x4a   :  { %509 = vmatprep.mubr.msk.f32.mxu0 %vm673_vm0, %v674_v1  ;;  %562 = vmatpush3.bf16.msra.mxu0 %v561_v54  ;;  %v242_v1 = vld [vmem:[#allocation5 + $0x148] sm:$0xff] }
  0x4b   :  { %563 = vmatprep.subr.bf16.mxu0 %v672_v0  ;;  %v573_v2 = vpack.c.bf16 %v242_v1, %v241_v63 }
  0x4e   :  { %565 = vmatpush3.bf16.msra.mxu0 %v564_v56 }
  0x4f   :  { %566 = vmatprep.subr.bf16.mxu0 %v672_v0 }
  0x52   :  { %568 = vmatpush3.bf16.msra.mxu0 %v567_v59 }
  0x53   :  { %569 = vmatprep.subr.bf16.mxu0 %v672_v0 }
  0x56   :  { %571 = vmatpush3.bf16.msra.mxu0 %v570_v62 }
  0x57   :  { %572 = vmatprep.subr.bf16.mxu0 %v672_v0 }
  0x5a   :  { %574 = vmatpush3.bf16.msra.mxu0 %v573_v2 }
  0x5b   :  { %575 = vmatprep.subr.bf16.mxu0 %v672_v0 }
  0x5e   :  { %577 = vmatpush3.bf16.msra.mxu0 %v576_v5 }
  0x5f   :  { %578 = vmatprep.subr.bf16.mxu0 %v672_v0 }
  0x62   :  { %580 = vmatpush3.bf16.msra.mxu0 %v579_v8 }
  0x63   :  { %581 = vmatprep.subr.bf16.mxu0 %v672_v0 }
  0x66   :  { %583 = vmatpush3.bf16.msra.mxu0 %v582_v16 }
 0x11c   :  { %v131_v10 = vpop.f32.mrb[0].mxu0 }
 0x11d   :  { %v132_v11 = vadd.f32 %v350_v9, %v131_v10  ;;  %v441_v12 = vpop.f32.mrb[1].mxu0 }
 0x11f   :  { %v135_v13 = vmax.f32 %v132_v11, 0.0 }
 0x121   :  { %475 = vmatmul.mubr.f32.vlgmr.msra.gmra.mrb[0].mxu1 %v135_v13 }
 0x1f4   :  { %v227_v18 = vpop.f32.mrb[0].mxu1 }
 0x1f5   :  { %v228_v19 = vadd.f32 %v352_v17, %v227_v18  ;;  %v476_v0 = vpop.f32.mrb[1].mxu1 }
 0x1f7   :  { %v231_v20 = vmax.f32 %v228_v19, 0.0 }
 0x1f9   :  { %510 = vmatmul.mubr.f32.vlgmr.msra.gmra.mrb[2].mxu0 %v231_v20 }
 0x2cc   :  { %v323_v22 = vpop.f32.mrb[2].mxu0 }
 0x2cd   :  { %v324_v23 = vadd.f32 %v354_v21, %v323_v22  ;;  %v511_v24 = vpop.f32.mrb[3].mxu0 }
 0x2cf   :  { %v355_v25 = vmul.f32 -1.442695, %v324_v23 }
 0x2d1   :  { %592 = vpow2.f32 %v355_v25 }
 0x2db   :  { %v593_v26 = vpop.eup %592 }
 0x2dc   :  { %v330_v27 = vadd.f32 1.0, %v593_v26 }
 0x2de   :  { %594 = vrcp.f32 %v330_v27 }
 0x2e8   :  { %v595_v28 = vpop.eup %594 }
 0x2e9   :  { %333 = vst [vmem:[#allocation7] sm:$0xff] %v595_v28 }
 0x2ea   :  { %651 = shalt.err (!%p648_p6)
}
 0x2eb   :  { %s652_s19 = scalar_lea.hbm %s781_s3, 128 }
 0x2ec   :  { %p653_p7 = scmp.ne.s32.totalorder %s781_s3, %s652_s19  ;;  %p656_p8 = scmp.lt.u32.totalorder %s652_s19, %s781_s3 }
 0x2ee   :  { %p658_p9 = pnand %p656_p8, %p653_p7 }
 0x2f0   :  { %661 = shalt.err (!%p658_p9)
}
 0x2f1   :  { %343 = dma.vmem_to_hbm [thread:$0]  %s341_s16, 128, %s781_s3, [#allocation4]  }
 0x2f2   :  { %666 = dma.done.wait [#allocation4], 128  }
 0x2f3   :  { %667 = vsyncadd [#allocation4], 4294967168 }
 0x2f4   :  { %347 = vsyncpa [#allocation3], 1 }
 0x2f5   :  { %348 = vsyncpa [#allocation6], 1 }
 0x2f6   :  { %349 = vsyncpa [#allocation4], 1 }

</bundles_post_ra>
